<compile_context>
chip_gen: v5e
topology: v5e:2x2
jax: 0.10.0
libtpu: 0.0.40
codegen_flags: <defaults>
</compile_context>

<pallas_src>
import jax
import jax.numpy as jnp
from jax.experimental import pallas as pl
from jax.experimental.pallas import tpu as pltpu  # noqa: F401  (kept for TPU backend)

# ----------------------------- model hyper-parameters -----------------------------
BATCH = 2
NUM_NODES = 8
BBX_SIZE = 4
LABEL_SIZE = 1
NUM_OBJ_CLASSES = 4
LATENT_DIMS = 8
OBJ_LATENT_DIMS = 2
HIDDEN1 = 32
HIDDEN2 = 16
HIDDEN3 = 128
DENSE_HIDDEN1 = 8
DENSE_HIDDEN2 = 4
DEC_HIDDEN = 64  # GCNDecoder hidden width (not exposed by the ctor)

GCN_IN = LABEL_SIZE + BBX_SIZE + NUM_OBJ_CLASSES            # 9
COND_OBJ = NUM_OBJ_CLASSES + OBJ_LATENT_DIMS                # 6
COND_Z = COND_OBJ + LATENT_DIMS                             # 14
DEC_IN = COND_Z + BBX_SIZE                                  # 18
NODE_OUT = BBX_SIZE + LABEL_SIZE                            # 5  -> [x_bbx | x_lbl]
GRAPH_OUT = 2 * LATENT_DIMS + 2 * OBJ_LATENT_DIMS + BBX_SIZE  # 24 -> [z_part_mv | z_obj_mv | x_obj_bbx]


# =============================== fused Pallas kernel ===============================
def _fused_forward_kernel(
    # inputs
    e_ref, xp_ref, xobj_ref, nodes_ref, cls_ref,
    gw1_ref, gw2_ref,
    ew3_ref, eb3_ref, ewmv_ref, ebmv_ref,
    dew1_ref, deb1_ref, dew2_ref, deb2_ref, dewmv_ref, debmv_ref,
    gdw1_ref, gdb1_ref, gdwbl_ref, gdbbl_ref,
    ddw1_ref, ddb1_ref, ddw2_ref, ddb2_ref, ddw3_ref, ddb3_ref,
    # outputs
    node_out_ref, graph_out_ref,
):
    f32 = jnp.float32
    B, N = BATCH, NUM_NODES

    E = e_ref[...]        # (B, N, N)
    Xp = xp_ref[...]      # (B*N, LABEL+BBX)
    cls = cls_ref[...]    # (B, C)

    # ---------------- GCNEncoder ----------------
    # H0 = concat(node feats, broadcast obj_class)
    cls_rep = jnp.broadcast_to(
        cls[:, None, :], (B, N, NUM_OBJ_CLASSES)).reshape(B * N, NUM_OBJ_CLASSES)
    h0 = jnp.concatenate([Xp, cls_rep], axis=-1)                              # (B*N, 9)

    # layer 1: relu(E @ (H0 @ W1))
    xw1 = jnp.dot(h0, gw1_ref[...], preferred_element_type=f32)               # (B*N, H1)
    h1 = jnp.maximum(
        jnp.einsum('bij,bjf->bif', E, xw1.reshape(B, N, HIDDEN1),
                   preferred_element_type=f32), 0.0)                          # (B, N, H1)

    # layer 2: relu(E @ (H1 @ W2))
    xw2 = jnp.dot(h1.reshape(B * N, HIDDEN1), gw2_ref[...],
                  preferred_element_type=f32)                                 # (B*N, H2)
    h2 = jnp.maximum(
        jnp.einsum('bij,bjf->bif', E, xw2.reshape(B, N, HIDDEN2),
                   preferred_element_type=f32), 0.0)                          # (B, N, H2)

    # dense: relu(flatten(H2) @ W3 + b3), done as an unrolled per-node accumulation
    # (ew3_ref is W3 pre-reshaped to (N, H2, H3)); avoids a lane-merging reshape.
    acc = jnp.zeros((B, HIDDEN3), f32)
    for n in range(N):
        acc = acc + jnp.dot(h2[:, n, :], ew3_ref[n], preferred_element_type=f32)
    h3 = jnp.maximum(acc + eb3_ref[...], 0.0)                                 # (B, H3)

    # fused [z_mean_part | z_logvar_part] head
    z_part_mv = jnp.dot(h3, ewmv_ref[...], preferred_element_type=f32) + ebmv_ref[...]  # (B, 2*LAT)
    z_mean_part = z_part_mv[:, :LATENT_DIMS]

    # ---------------- dense object Encoder ----------------
    h = jnp.maximum(jnp.dot(xobj_ref[...], dew1_ref[...],
                            preferred_element_type=f32) + deb1_ref[...], 0.0)
    h = jnp.maximum(jnp.dot(h, dew2_ref[...],
                            preferred_element_type=f32) + deb2_ref[...], 0.0)
    z_obj_mv = jnp.dot(h, dewmv_ref[...], preferred_element_type=f32) + debmv_ref[...]   # (B, 2*OBJ_LAT)
    z_mean_obj = z_obj_mv[:, :OBJ_LATENT_DIMS]

    # ---------------- conditioning / glue (all in VMEM) ----------------
    cond_obj = jnp.concatenate([cls, z_mean_obj], axis=-1)                    # (B, 6)
    cond_z = jnp.concatenate([cond_obj, z_mean_part], axis=-1)                # (B, 14)
    # repeat_interleave(cond_z, N, dim=0)
    gcn_cond = jnp.broadcast_to(
        cond_z[:, None, :], (B, N, COND_Z)).reshape(B * N, COND_Z)            # (B*N, 14)
    # nodes.reshape(-1,1).repeat(1, bbx_size)
    nodes_rep = jnp.broadcast_to(nodes_ref[...], (B * N, BBX_SIZE))           # (B*N, 4)
    dec_in = jnp.concatenate([gcn_cond, nodes_rep], axis=-1)                  # (B*N, 18)

    # ---------------- GCNDecoder (per-node MLP, fused [bbx|lbl] head) ----------------
    hd = jnp.maximum(jnp.dot(dec_in, gdw1_ref[...],
                             preferred_element_type=f32) + gdb1_ref[...], 0.0)            # (B*N, 64)
    out_bl = jax.nn.sigmoid(
        jnp.dot(hd, gdwbl_ref[...], preferred_element_type=f32) + gdbbl_ref[...])         # (B*N, 5)

    # ---------------- dense object Decoder ----------------
    hdd = jnp.maximum(jnp.dot(cond_obj, ddw1_ref[...],
                              preferred_element_type=f32) + ddb1_ref[...], 0.0)
    hdd = jnp.maximum(jnp.dot(hdd, ddw2_ref[...],
                              preferred_element_type=f32) + ddb2_ref[...], 0.0)
    x_obj_bbx = jax.nn.sigmoid(
        jnp.dot(hdd, ddw3_ref[...], preferred_element_type=f32) + ddb3_ref[...])           # (B, 4)

    # ---------------- packed outputs ----------------
    node_out_ref[...] = out_bl.astype(node_out_ref.dtype)                     # [x_bbx | x_lbl]
    graph_out_ref[...] = jnp.concatenate(
        [z_part_mv, z_obj_mv, x_obj_bbx], axis=-1).astype(graph_out_ref.dtype)


# =============================== parameters ========================================
def init_params(key):
    def rand(k, shape):
        return jax.random.normal(k, shape, jnp.float32) * 0.1

    keys = jax.random.split(key, 24)
    p = {}
    # GCNEncoder
    p["enc_gcn_w1"] = rand(keys[0], (GCN_IN, HIDDEN1))
    p["enc_gcn_w2"] = rand(keys[1], (HIDDEN1, HIDDEN2))
    # W3 stored pre-reshaped as (N, HIDDEN2, HIDDEN3) == reshape of (N*HIDDEN2, HIDDEN3)
    p["enc_w3r"] = rand(keys[2], (NUM_NODES, HIDDEN2, HIDDEN3))
    p["enc_b3"] = rand(keys[3], (1, HIDDEN3))
    # fused [mean | logvar] head
    p["enc_wmv"] = rand(keys[4], (HIDDEN3, 2 * LATENT_DIMS))
    p["enc_bmv"] = rand(keys[5], (1, 2 * LATENT_DIMS))
    # dense object Encoder
    p["de_w1"] = rand(keys[6], (BBX_SIZE, DENSE_HIDDEN1)); p["de_b1"] = rand(keys[7], (1, DENSE_HIDDEN1))
    p["de_w2"] = rand(keys[8], (DENSE_HIDDEN1, DENSE_HIDDEN2)); p["de_b2"] = rand(keys[9], (1, DENSE_HIDDEN2))
    p["de_wmv"] = rand(keys[10], (DENSE_HIDDEN2, 2 * OBJ_LATENT_DIMS)); p["de_bmv"] = rand(keys[11], (1, 2 * OBJ_LATENT_DIMS))
    # GCNDecoder (fused [bbx | lbl] head)
    p["gd_w1"] = rand(keys[12], (DEC_IN, DEC_HIDDEN)); p["gd_b1"] = rand(keys[13], (1, DEC_HIDDEN))
    p["gd_wbl"] = rand(keys[14], (DEC_HIDDEN, NODE_OUT)); p["gd_bbl"] = rand(keys[15], (1, NODE_OUT))
    # dense object Decoder
    p["dd_w1"] = rand(keys[16], (COND_OBJ, DENSE_HIDDEN2)); p["dd_b1"] = rand(keys[17], (1, DENSE_HIDDEN2))
    p["dd_w2"] = rand(keys[18], (DENSE_HIDDEN2, DENSE_HIDDEN1)); p["dd_b2"] = rand(keys[19], (1, DENSE_HIDDEN1))
    p["dd_w3"] = rand(keys[20], (DENSE_HIDDEN1, BBX_SIZE)); p["dd_b3"] = rand(keys[21], (1, BBX_SIZE))
    return p


# =============================== forward pass ======================================
def two_stage_autoencoder_forward(params, E, X_part, X_obj, nodes, obj_class):
    """Mirrors TwoStageAutoEncoder.forward with variational=False, coupling=False,
    obj_bbx_conditioning=False, use_fft_on_bbx=False, dynamic_margin=False."""
    B, N, _ = E.shape
    nodes_col = nodes.reshape(B * N, 1)

    node_out, graph_out = pl.pallas_call(
        _fused_forward_kernel,
        out_shape=(
            jax.ShapeDtypeStruct((B * N, NODE_OUT), jnp.float32),
            jax.ShapeDtypeStruct((B, GRAPH_OUT), jnp.float32),
        ),
    )(
        E, X_part, X_obj, nodes_col, obj_class,
        params["enc_gcn_w1"], params["enc_gcn_w2"],
        params["enc_w3r"], params["enc_b3"], params["enc_wmv"], params["enc_bmv"],
        params["de_w1"], params["de_b1"], params["de_w2"], params["de_b2"],
        params["de_wmv"], params["de_bmv"],
        params["gd_w1"], params["gd_b1"], params["gd_wbl"], params["gd_bbl"],
        params["dd_w1"], params["dd_b1"], params["dd_w2"], params["dd_b2"],
        params["dd_w3"], params["dd_b3"],
    )

    # unpack the two lane-contiguous slabs
    x_bbx = node_out[:, :BBX_SIZE]
    x_lbl = node_out[:, BBX_SIZE:BBX_SIZE + LABEL_SIZE]
    z_mean_part = graph_out[:, :LATENT_DIMS]
    z_logvar_part = graph_out[:, LATENT_DIMS:2 * LATENT_DIMS]
    o0 = 2 * LATENT_DIMS
    z_mean_obj = graph_out[:, o0:o0 + OBJ_LATENT_DIMS]
    z_logvar_obj = graph_out[:, o0 + OBJ_LATENT_DIMS:o0 + 2 * OBJ_LATENT_DIMS]
    x_obj_bbx = graph_out[:, o0 + 2 * OBJ_LATENT_DIMS:]
    return (x_bbx, x_obj_bbx, x_lbl, z_mean_part, z_logvar_part, z_mean_obj, z_logvar_obj)


# =============================== pure-JAX reference ================================
def reference_forward(params, E, X_part, X_obj, nodes, obj_class):
    B, N, _ = E.shape
    Xp = X_part.reshape(B, N, LABEL_SIZE + BBX_SIZE)
    obj_b = jnp.broadcast_to(obj_class[:, None, :], (B, N, NUM_OBJ_CLASSES))
    H0 = jnp.concatenate([Xp, obj_b], axis=-1)

    def gcn(Ea, X, W):
        return jax.nn.relu(jnp.einsum('bij,bjf->bif', Ea, X @ W))

    H1 = gcn(E, H0, params["enc_gcn_w1"])
    H2 = gcn(E, H1, params["enc_gcn_w2"])
    flat = H2.reshape(B, N * HIDDEN2)
    W3 = params["enc_w3r"].reshape(N * HIDDEN2, HIDDEN3)
    H3 = jax.nn.relu(flat @ W3 + params["enc_b3"])
    z_part = H3 @ params["enc_wmv"] + params["enc_bmv"]
    z_mean_part, z_logvar_part = z_part[:, :LATENT_DIMS], z_part[:, LATENT_DIMS:]

    h = jax.nn.relu(X_obj @ params["de_w1"] + params["de_b1"])
    h = jax.nn.relu(h @ params["de_w2"] + params["de_b2"])
    z_obj = h @ params["de_wmv"] + params["de_bmv"]
    z_mean_obj, z_logvar_obj = z_obj[:, :OBJ_LATENT_DIMS], z_obj[:, OBJ_LATENT_DIMS:]

    cond_obj = jnp.concatenate([obj_class, z_mean_obj], axis=-1)
    cond_z = jnp.concatenate([cond_obj, z_mean_part], axis=-1)
    gcn_cond = jnp.repeat(cond_z, N, axis=0)
    nodes_rep = jnp.tile(nodes.reshape(B * N, 1), (1, BBX_SIZE))
    dec_in = jnp.concatenate([gcn_cond, nodes_rep], axis=-1)
    hd = jax.nn.relu(dec_in @ params["gd_w1"] + params["gd_b1"])
    out_bl = jax.nn.sigmoid(hd @ params["gd_wbl"] + params["gd_bbl"])
    x_bbx, x_lbl = out_bl[:, :BBX_SIZE], out_bl[:, BBX_SIZE:]

    hdd = jax.nn.relu(cond_obj @ params["dd_w1"] + params["dd_b1"])
    hdd = jax.nn.relu(hdd @ params["dd_w2"] + params["dd_b2"])
    x_obj_bbx = jax.nn.sigmoid(hdd @ params["dd_w3"] + params["dd_b3"])
    return (x_bbx, x_obj_bbx, x_lbl, z_mean_part, z_logvar_part, z_mean_obj, z_logvar_obj)


# =============================== driver ============================================
if __name__ == "__main__":
    key = jax.random.PRNGKey(0)
    kp, ke, kx, ko, kn, kc = jax.random.split(key, 6)

    params = init_params(kp)

    # Symmetric, row-normalised adjacency (B, N, N)
    A = jax.random.uniform(ke, (BATCH, NUM_NODES, NUM_NODES), jnp.float32)
    A = 0.5 * (A + jnp.swapaxes(A, -1, -2)) + jnp.eye(NUM_NODES)[None]
    E = A / jnp.sum(A, axis=-1, keepdims=True)

    X_part = jax.random.uniform(kx, (BATCH * NUM_NODES, LABEL_SIZE + BBX_SIZE), jnp.float32)
    X_obj = jax.random.uniform(ko, (BATCH, BBX_SIZE), jnp.float32)
    nodes = jax.random.uniform(kn, (BATCH, NUM_NODES), jnp.float32)
    cls_idx = jax.random.randint(kc, (BATCH,), 0, NUM_OBJ_CLASSES)
    obj_class = jax.nn.one_hot(cls_idx, NUM_OBJ_CLASSES, dtype=jnp.float32)

    fwd = jax.jit(two_stage_autoencoder_forward)
    outs = jax.block_until_ready(fwd(params, E, X_part, X_obj, nodes, obj_class))

    expected_shapes = [
        (BATCH * NUM_NODES, BBX_SIZE),      # x_bbx
        (BATCH, BBX_SIZE),                  # x_obj_bbx
        (BATCH * NUM_NODES, LABEL_SIZE),    # x_lbl
        (BATCH, LATENT_DIMS),               # z_mean_part
        (BATCH, LATENT_DIMS),               # z_logvar_part
        (BATCH, OBJ_LATENT_DIMS),           # z_mean_obj
        (BATCH, OBJ_LATENT_DIMS),           # z_logvar_obj
    ]
    assert all(o.shape == s for o, s in zip(outs, expected_shapes))
    assert all(bool(jnp.all(jnp.isfinite(o))) for o in outs)

    # correctness vs pure-JAX reference (loose tolerance covers MXU precision paths)
    refs = jax.block_until_ready(jax.jit(reference_forward)(params, E, X_part, X_obj, nodes, obj_class))
    for o, r in zip(outs, refs):
        assert o.shape == r.shape
        assert bool(jnp.max(jnp.abs(o - r)) < 2e-2)

    print("KERNEL_OK")
</pallas_src>

<mosaic_0001>
module attributes {stable_mosaic.version = 11 : i64} {
  func.func @_fused_forward_kernel(%arg0: memref<2x8x8xf32, #tpu.memory_space<vmem>>, %arg1: memref<16x5xf32, #tpu.memory_space<vmem>>, %arg2: memref<2x4xf32, #tpu.memory_space<vmem>>, %arg3: memref<16x1xf32, #tpu.memory_space<vmem>>, %arg4: memref<2x4xf32, #tpu.memory_space<vmem>>, %arg5: memref<9x32xf32, #tpu.memory_space<vmem>>, %arg6: memref<32x16xf32, #tpu.memory_space<vmem>>, %arg7: memref<8x16x128xf32, #tpu.memory_space<vmem>>, %arg8: memref<1x128xf32, #tpu.memory_space<vmem>>, %arg9: memref<128x16xf32, #tpu.memory_space<vmem>>, %arg10: memref<1x16xf32, #tpu.memory_space<vmem>>, %arg11: memref<4x8xf32, #tpu.memory_space<vmem>>, %arg12: memref<1x8xf32, #tpu.memory_space<vmem>>, %arg13: memref<8x4xf32, #tpu.memory_space<vmem>>, %arg14: memref<1x4xf32, #tpu.memory_space<vmem>>, %arg15: memref<4x4xf32, #tpu.memory_space<vmem>>, %arg16: memref<1x4xf32, #tpu.memory_space<vmem>>, %arg17: memref<18x64xf32, #tpu.memory_space<vmem>>, %arg18: memref<1x64xf32, #tpu.memory_space<vmem>>, %arg19: memref<64x5xf32, #tpu.memory_space<vmem>>, %arg20: memref<1x5xf32, #tpu.memory_space<vmem>>, %arg21: memref<6x4xf32, #tpu.memory_space<vmem>>, %arg22: memref<1x4xf32, #tpu.memory_space<vmem>>, %arg23: memref<4x8xf32, #tpu.memory_space<vmem>>, %arg24: memref<1x8xf32, #tpu.memory_space<vmem>>, %arg25: memref<8x4xf32, #tpu.memory_space<vmem>>, %arg26: memref<1x4xf32, #tpu.memory_space<vmem>>, %arg27: memref<16x5xf32, #tpu.memory_space<vmem>>, %arg28: memref<2x24xf32, #tpu.memory_space<vmem>>) attributes {dimension_semantics = [], scalar_prefetch = 0 : i64, scratch_operands = 0 : i64, tpu.core_type = #tpu.core_type<tc>} {
    %c0 = arith.constant 0 : index
    %c0_0 = arith.constant 0 : index
    %c0_1 = arith.constant 0 : index
    %0 = vector.load %arg0[%c0, %c0_0, %c0_1] : memref<2x8x8xf32, #tpu.memory_space<vmem>>, vector<2x8x8xf32>
    %c0_2 = arith.constant 0 : index
    %c0_3 = arith.constant 0 : index
    %1 = vector.load %arg1[%c0_2, %c0_3] : memref<16x5xf32, #tpu.memory_space<vmem>>, vector<16x5xf32>
    %c0_4 = arith.constant 0 : index
    %c0_5 = arith.constant 0 : index
    %2 = vector.load %arg4[%c0_4, %c0_5] : memref<2x4xf32, #tpu.memory_space<vmem>>, vector<2x4xf32>
    %3 = vector.shape_cast %2 : vector<2x4xf32> to vector<2x1x4xf32>
    %4 = vector.shape_cast %3 : vector<2x1x4xf32> to vector<2x1x4xf32>
    %5 = vector.broadcast %4 : vector<2x1x4xf32> to vector<2x8x4xf32>
    %6 = vector.shape_cast %5 : vector<2x8x4xf32> to vector<16x4xf32>
    %7 = tpu.concatenate %1, %6 in 1 : vector<16x5xf32>, vector<16x4xf32> -> vector<16x9xf32>
    %c0_6 = arith.constant 0 : index
    %c0_7 = arith.constant 0 : index
    %8 = vector.load %arg5[%c0_6, %c0_7] : memref<9x32xf32, #tpu.memory_space<vmem>>, vector<9x32xf32>
    %cst = arith.constant dense<0.000000e+00> : vector<16x32xf32>
    %9 = tpu.matmul %7, %8, %cst {dimension_numbers = #tpu.dot_dimension_numbers<[1], [0], [0], [1], [0, 0, 1, 1], [], []>} : vector<16x9xf32>, vector<9x32xf32>, vector<16x32xf32> -> vector<16x32xf32>
    %10 = vector.shape_cast %9 : vector<16x32xf32> to vector<2x8x32xf32>
    "tpu.trace_start"() <{level = 10 : i32, message = "bij,bjf->bif"}> : () -> ()
    %cst_8 = arith.constant dense<0.000000e+00> : vector<2x8x32xf32>
    %11 = tpu.matmul %0, %10, %cst_8 {dimension_numbers = #tpu.dot_dimension_numbers<[2], [1], [1], [2], [0, 0, 0, 1, 1, 2], [0], [0]>} : vector<2x8x8xf32>, vector<2x8x32xf32>, vector<2x8x32xf32> -> vector<2x8x32xf32>
    "tpu.trace_stop"() : () -> ()
    %cst_9 = arith.constant 0.000000e+00 : f32
    %12 = vector.broadcast %cst_9 : f32 to vector<2x8x32xf32>
    %13 = arith.maximumf %11, %12 : vector<2x8x32xf32>
    %14 = vector.shape_cast %13 : vector<2x8x32xf32> to vector<16x32xf32>
    %c0_10 = arith.constant 0 : index
    %c0_11 = arith.constant 0 : index
    %15 = vector.load %arg6[%c0_10, %c0_11] : memref<32x16xf32, #tpu.memory_space<vmem>>, vector<32x16xf32>
    %cst_12 = arith.constant dense<0.000000e+00> : vector<16x16xf32>
    %16 = tpu.matmul %14, %15, %cst_12 {dimension_numbers = #tpu.dot_dimension_numbers<[1], [0], [0], [1], [0, 0, 1, 1], [], []>} : vector<16x32xf32>, vector<32x16xf32>, vector<16x16xf32> -> vector<16x16xf32>
    %17 = vector.shape_cast %16 : vector<16x16xf32> to vector<2x8x16xf32>
    "tpu.trace_start"() <{level = 10 : i32, message = "bij,bjf->bif"}> : () -> ()
    %cst_13 = arith.constant dense<0.000000e+00> : vector<2x8x16xf32>
    %18 = tpu.matmul %0, %17, %cst_13 {dimension_numbers = #tpu.dot_dimension_numbers<[2], [1], [1], [2], [0, 0, 0, 1, 1, 2], [0], [0]>} : vector<2x8x8xf32>, vector<2x8x16xf32>, vector<2x8x16xf32> -> vector<2x8x16xf32>
    "tpu.trace_stop"() : () -> ()
    %cst_14 = arith.constant 0.000000e+00 : f32
    %19 = vector.broadcast %cst_14 : f32 to vector<2x8x16xf32>
    %20 = arith.maximumf %18, %19 : vector<2x8x16xf32>
    %cst_15 = arith.constant 0.000000e+00 : f32
    %21 = vector.broadcast %cst_15 : f32 to vector<2x128xf32>
    %22 = vector.extract_strided_slice %20 {offsets = [0, 0, 0], sizes = [2, 1, 16], strides = [1, 1, 1]} : vector<2x8x16xf32> to vector<2x1x16xf32>
    %23 = vector.shape_cast %22 : vector<2x1x16xf32> to vector<2x16xf32>
    %c0_16 = arith.constant 0 : index
    %c0_17 = arith.constant 0 : index
    %c0_18 = arith.constant 0 : index
    %24 = vector.load %arg7[%c0_16, %c0_17, %c0_18] : memref<8x16x128xf32, #tpu.memory_space<vmem>>, vector<1x16x128xf32>
    %25 = vector.shape_cast %24 : vector<1x16x128xf32> to vector<16x128xf32>
    %cst_19 = arith.constant dense<0.000000e+00> : vector<2x128xf32>
    %26 = tpu.matmul %23, %25, %cst_19 {dimension_numbers = #tpu.dot_dimension_numbers<[1], [0], [0], [1], [0, 0, 1, 1], [], []>} : vector<2x16xf32>, vector<16x128xf32>, vector<2x128xf32> -> vector<2x128xf32>
    %27 = arith.addf %21, %26 : vector<2x128xf32>
    %28 = vector.extract_strided_slice %20 {offsets = [0, 1, 0], sizes = [2, 1, 16], strides = [1, 1, 1]} : vector<2x8x16xf32> to vector<2x1x16xf32>
    %29 = vector.shape_cast %28 : vector<2x1x16xf32> to vector<2x16xf32>
    %c1 = arith.constant 1 : index
    %c0_20 = arith.constant 0 : index
    %c0_21 = arith.constant 0 : index
    %30 = vector.load %arg7[%c1, %c0_20, %c0_21] : memref<8x16x128xf32, #tpu.memory_space<vmem>>, vector<1x16x128xf32>
    %31 = vector.shape_cast %30 : vector<1x16x128xf32> to vector<16x128xf32>
    %cst_22 = arith.constant dense<0.000000e+00> : vector<2x128xf32>
    %32 = tpu.matmul %29, %31, %cst_22 {dimension_numbers = #tpu.dot_dimension_numbers<[1], [0], [0], [1], [0, 0, 1, 1], [], []>} : vector<2x16xf32>, vector<16x128xf32>, vector<2x128xf32> -> vector<2x128xf32>
    %33 = arith.addf %27, %32 : vector<2x128xf32>
    %34 = vector.extract_strided_slice %20 {offsets = [0, 2, 0], sizes = [2, 1, 16], strides = [1, 1, 1]} : vector<2x8x16xf32> to vector<2x1x16xf32>
    %35 = vector.shape_cast %34 : vector<2x1x16xf32> to vector<2x16xf32>
    %c2 = arith.constant 2 : index
    %c0_23 = arith.constant 0 : index
    %c0_24 = arith.constant 0 : index
    %36 = vector.load %arg7[%c2, %c0_23, %c0_24] : memref<8x16x128xf32, #tpu.memory_space<vmem>>, vector<1x16x128xf32>
    %37 = vector.shape_cast %36 : vector<1x16x128xf32> to vector<16x128xf32>
    %cst_25 = arith.constant dense<0.000000e+00> : vector<2x128xf32>
    %38 = tpu.matmul %35, %37, %cst_25 {dimension_numbers = #tpu.dot_dimension_numbers<[1], [0], [0], [1], [0, 0, 1, 1], [], []>} : vector<2x16xf32>, vector<16x128xf32>, vector<2x128xf32> -> vector<2x128xf32>
    %39 = arith.addf %33, %38 : vector<2x128xf32>
    %40 = vector.extract_strided_slice %20 {offsets = [0, 3, 0], sizes = [2, 1, 16], strides = [1, 1, 1]} : vector<2x8x16xf32> to vector<2x1x16xf32>
    %41 = vector.shape_cast %40 : vector<2x1x16xf32> to vector<2x16xf32>
    %c3 = arith.constant 3 : index
    %c0_26 = arith.constant 0 : index
    %c0_27 = arith.constant 0 : index
    %42 = vector.load %arg7[%c3, %c0_26, %c0_27] : memref<8x16x128xf32, #tpu.memory_space<vmem>>, vector<1x16x128xf32>
    %43 = vector.shape_cast %42 : vector<1x16x128xf32> to vector<16x128xf32>
    %cst_28 = arith.constant dense<0.000000e+00> : vector<2x128xf32>
    %44 = tpu.matmul %41, %43, %cst_28 {dimension_numbers = #tpu.dot_dimension_numbers<[1], [0], [0], [1], [0, 0, 1, 1], [], []>} : vector<2x16xf32>, vector<16x128xf32>, vector<2x128xf32> -> vector<2x128xf32>
    %45 = arith.addf %39, %44 : vector<2x128xf32>
    %46 = vector.extract_strided_slice %20 {offsets = [0, 4, 0], sizes = [2, 1, 16], strides = [1, 1, 1]} : vector<2x8x16xf32> to vector<2x1x16xf32>
    %47 = vector.shape_cast %46 : vector<2x1x16xf32> to vector<2x16xf32>
    %c4 = arith.constant 4 : index
    %c0_29 = arith.constant 0 : index
    %c0_30 = arith.constant 0 : index
    %48 = vector.load %arg7[%c4, %c0_29, %c0_30] : memref<8x16x128xf32, #tpu.memory_space<vmem>>, vector<1x16x128xf32>
    %49 = vector.shape_cast %48 : vector<1x16x128xf32> to vector<16x128xf32>
    %cst_31 = arith.constant dense<0.000000e+00> : vector<2x128xf32>
    %50 = tpu.matmul %47, %49, %cst_31 {dimension_numbers = #tpu.dot_dimension_numbers<[1], [0], [0], [1], [0, 0, 1, 1], [], []>} : vector<2x16xf32>, vector<16x128xf32>, vector<2x128xf32> -> vector<2x128xf32>
    %51 = arith.addf %45, %50 : vector<2x128xf32>
    %52 = vector.extract_strided_slice %20 {offsets = [0, 5, 0], sizes = [2, 1, 16], strides = [1, 1, 1]} : vector<2x8x16xf32> to vector<2x1x16xf32>
    %53 = vector.shape_cast %52 : vector<2x1x16xf32> to vector<2x16xf32>
    %c5 = arith.constant 5 : index
    %c0_32 = arith.constant 0 : index
    %c0_33 = arith.constant 0 : index
    %54 = vector.load %arg7[%c5, %c0_32, %c0_33] : memref<8x16x128xf32, #tpu.memory_space<vmem>>, vector<1x16x128xf32>
    %55 = vector.shape_cast %54 : vector<1x16x128xf32> to vector<16x128xf32>
    %cst_34 = arith.constant dense<0.000000e+00> : vector<2x128xf32>
    %56 = tpu.matmul %53, %55, %cst_34 {dimension_numbers = #tpu.dot_dimension_numbers<[1], [0], [0], [1], [0, 0, 1, 1], [], []>} : vector<2x16xf32>, vector<16x128xf32>, vector<2x128xf32> -> vector<2x128xf32>
    %57 = arith.addf %51, %56 : vector<2x128xf32>
    %58 = vector.extract_strided_slice %20 {offsets = [0, 6, 0], sizes = [2, 1, 16], strides = [1, 1, 1]} : vector<2x8x16xf32> to vector<2x1x16xf32>
    %59 = vector.shape_cast %58 : vector<2x1x16xf32> to vector<2x16xf32>
    %c6 = arith.constant 6 : index
    %c0_35 = arith.constant 0 : index
    %c0_36 = arith.constant 0 : index
    %60 = vector.load %arg7[%c6, %c0_35, %c0_36] : memref<8x16x128xf32, #tpu.memory_space<vmem>>, vector<1x16x128xf32>
    %61 = vector.shape_cast %60 : vector<1x16x128xf32> to vector<16x128xf32>
    %cst_37 = arith.constant dense<0.000000e+00> : vector<2x128xf32>
    %62 = tpu.matmul %59, %61, %cst_37 {dimension_numbers = #tpu.dot_dimension_numbers<[1], [0], [0], [1], [0, 0, 1, 1], [], []>} : vector<2x16xf32>, vector<16x128xf32>, vector<2x128xf32> -> vector<2x128xf32>
    %63 = arith.addf %57, %62 : vector<2x128xf32>
    %64 = vector.extract_strided_slice %20 {offsets = [0, 7, 0], sizes = [2, 1, 16], strides = [1, 1, 1]} : vector<2x8x16xf32> to vector<2x1x16xf32>
    %65 = vector.shape_cast %64 : vector<2x1x16xf32> to vector<2x16xf32>
    %c7 = arith.constant 7 : index
    %c0_38 = arith.constant 0 : index
    %c0_39 = arith.constant 0 : index
    %66 = vector.load %arg7[%c7, %c0_38, %c0_39] : memref<8x16x128xf32, #tpu.memory_space<vmem>>, vector<1x16x128xf32>
    %67 = vector.shape_cast %66 : vector<1x16x128xf32> to vector<16x128xf32>
    %cst_40 = arith.constant dense<0.000000e+00> : vector<2x128xf32>
    %68 = tpu.matmul %65, %67, %cst_40 {dimension_numbers = #tpu.dot_dimension_numbers<[1], [0], [0], [1], [0, 0, 1, 1], [], []>} : vector<2x16xf32>, vector<16x128xf32>, vector<2x128xf32> -> vector<2x128xf32>
    %69 = arith.addf %63, %68 : vector<2x128xf32>
    %c0_41 = arith.constant 0 : index
    %c0_42 = arith.constant 0 : index
    %70 = vector.load %arg8[%c0_41, %c0_42] : memref<1x128xf32, #tpu.memory_space<vmem>>, vector<1x128xf32>
    %71 = vector.broadcast %70 : vector<1x128xf32> to vector<2x128xf32>
    %72 = arith.addf %69, %71 : vector<2x128xf32>
    %cst_43 = arith.constant 0.000000e+00 : f32
    %73 = vector.broadcast %cst_43 : f32 to vector<2x128xf32>
    %74 = arith.maximumf %72, %73 : vector<2x128xf32>
    %c0_44 = arith.constant 0 : index
    %c0_45 = arith.constant 0 : index
    %75 = vector.load %arg9[%c0_44, %c0_45] : memref<128x16xf32, #tpu.memory_space<vmem>>, vector<128x16xf32>
    %cst_46 = arith.constant dense<0.000000e+00> : vector<2x16xf32>
    %76 = tpu.matmul %74, %75, %cst_46 {dimension_numbers = #tpu.dot_dimension_numbers<[1], [0], [0], [1], [0, 0, 1, 1], [], []>} : vector<2x128xf32>, vector<128x16xf32>, vector<2x16xf32> -> vector<2x16xf32>
    %c0_47 = arith.constant 0 : index
    %c0_48 = arith.constant 0 : index
    %77 = vector.load %arg10[%c0_47, %c0_48] : memref<1x16xf32, #tpu.memory_space<vmem>>, vector<1x16xf32>
    %78 = vector.broadcast %77 : vector<1x16xf32> to vector<2x16xf32>
    %79 = arith.addf %76, %78 : vector<2x16xf32>
    %80 = vector.extract_strided_slice %79 {offsets = [0, 0], sizes = [2, 8], strides = [1, 1]} : vector<2x16xf32> to vector<2x8xf32>
    %c0_49 = arith.constant 0 : index
    %c0_50 = arith.constant 0 : index
    %81 = vector.load %arg2[%c0_49, %c0_50] : memref<2x4xf32, #tpu.memory_space<vmem>>, vector<2x4xf32>
    %c0_51 = arith.constant 0 : index
    %c0_52 = arith.constant 0 : index
    %82 = vector.load %arg11[%c0_51, %c0_52] : memref<4x8xf32, #tpu.memory_space<vmem>>, vector<4x8xf32>
    %cst_53 = arith.constant dense<0.000000e+00> : vector<2x8xf32>
    %83 = tpu.matmul %81, %82, %cst_53 {dimension_numbers = #tpu.dot_dimension_numbers<[1], [0], [0], [1], [0, 0, 1, 1], [], []>} : vector<2x4xf32>, vector<4x8xf32>, vector<2x8xf32> -> vector<2x8xf32>
    %c0_54 = arith.constant 0 : index
    %c0_55 = arith.constant 0 : index
    %84 = vector.load %arg12[%c0_54, %c0_55] : memref<1x8xf32, #tpu.memory_space<vmem>>, vector<1x8xf32>
    %85 = vector.broadcast %84 : vector<1x8xf32> to vector<2x8xf32>
    %86 = arith.addf %83, %85 : vector<2x8xf32>
    %cst_56 = arith.constant 0.000000e+00 : f32
    %87 = vector.broadcast %cst_56 : f32 to vector<2x8xf32>
    %88 = arith.maximumf %86, %87 : vector<2x8xf32>
    %c0_57 = arith.constant 0 : index
    %c0_58 = arith.constant 0 : index
    %89 = vector.load %arg13[%c0_57, %c0_58] : memref<8x4xf32, #tpu.memory_space<vmem>>, vector<8x4xf32>
    %cst_59 = arith.constant dense<0.000000e+00> : vector<2x4xf32>
    %90 = tpu.matmul %88, %89, %cst_59 {dimension_numbers = #tpu.dot_dimension_numbers<[1], [0], [0], [1], [0, 0, 1, 1], [], []>} : vector<2x8xf32>, vector<8x4xf32>, vector<2x4xf32> -> vector<2x4xf32>
    %c0_60 = arith.constant 0 : index
    %c0_61 = arith.constant 0 : index
    %91 = vector.load %arg14[%c0_60, %c0_61] : memref<1x4xf32, #tpu.memory_space<vmem>>, vector<1x4xf32>
    %92 = vector.broadcast %91 : vector<1x4xf32> to vector<2x4xf32>
    %93 = arith.addf %90, %92 : vector<2x4xf32>
    %cst_62 = arith.constant 0.000000e+00 : f32
    %94 = vector.broadcast %cst_62 : f32 to vector<2x4xf32>
    %95 = arith.maximumf %93, %94 : vector<2x4xf32>
    %c0_63 = arith.constant 0 : index
    %c0_64 = arith.constant 0 : index
    %96 = vector.load %arg15[%c0_63, %c0_64] : memref<4x4xf32, #tpu.memory_space<vmem>>, vector<4x4xf32>
    %cst_65 = arith.constant dense<0.000000e+00> : vector<2x4xf32>
    %97 = tpu.matmul %95, %96, %cst_65 {dimension_numbers = #tpu.dot_dimension_numbers<[1], [0], [0], [1], [0, 0, 1, 1], [], []>} : vector<2x4xf32>, vector<4x4xf32>, vector<2x4xf32> -> vector<2x4xf32>
    %c0_66 = arith.constant 0 : index
    %c0_67 = arith.constant 0 : index
    %98 = vector.load %arg16[%c0_66, %c0_67] : memref<1x4xf32, #tpu.memory_space<vmem>>, vector<1x4xf32>
    %99 = vector.broadcast %98 : vector<1x4xf32> to vector<2x4xf32>
    %100 = arith.addf %97, %99 : vector<2x4xf32>
    %101 = vector.extract_strided_slice %100 {offsets = [0, 0], sizes = [2, 2], strides = [1, 1]} : vector<2x4xf32> to vector<2x2xf32>
    %102 = tpu.concatenate %2, %101 in 1 : vector<2x4xf32>, vector<2x2xf32> -> vector<2x6xf32>
    %103 = tpu.concatenate %102, %80 in 1 : vector<2x6xf32>, vector<2x8xf32> -> vector<2x14xf32>
    %104 = vector.shape_cast %103 : vector<2x14xf32> to vector<2x1x14xf32>
    %105 = vector.shape_cast %104 : vector<2x1x14xf32> to vector<2x1x14xf32>
    %106 = vector.broadcast %105 : vector<2x1x14xf32> to vector<2x8x14xf32>
    %107 = vector.shape_cast %106 : vector<2x8x14xf32> to vector<16x14xf32>
    %c0_68 = arith.constant 0 : index
    %c0_69 = arith.constant 0 : index
    %108 = vector.load %arg3[%c0_68, %c0_69] : memref<16x1xf32, #tpu.memory_space<vmem>>, vector<16x1xf32>
    %109 = vector.shape_cast %108 : vector<16x1xf32> to vector<16x1xf32>
    %110 = vector.broadcast %109 : vector<16x1xf32> to vector<16x4xf32>
    %111 = tpu.concatenate %107, %110 in 1 : vector<16x14xf32>, vector<16x4xf32> -> vector<16x18xf32>
    %c0_70 = arith.constant 0 : index
    %c0_71 = arith.constant 0 : index
    %112 = vector.load %arg17[%c0_70, %c0_71] : memref<18x64xf32, #tpu.memory_space<vmem>>, vector<18x64xf32>
    %cst_72 = arith.constant dense<0.000000e+00> : vector<16x64xf32>
    %113 = tpu.matmul %111, %112, %cst_72 {dimension_numbers = #tpu.dot_dimension_numbers<[1], [0], [0], [1], [0, 0, 1, 1], [], []>} : vector<16x18xf32>, vector<18x64xf32>, vector<16x64xf32> -> vector<16x64xf32>
    %c0_73 = arith.constant 0 : index
    %c0_74 = arith.constant 0 : index
    %114 = vector.load %arg18[%c0_73, %c0_74] : memref<1x64xf32, #tpu.memory_space<vmem>>, vector<1x64xf32>
    %115 = vector.broadcast %114 : vector<1x64xf32> to vector<16x64xf32>
    %116 = arith.addf %113, %115 : vector<16x64xf32>
    %cst_75 = arith.constant 0.000000e+00 : f32
    %117 = vector.broadcast %cst_75 : f32 to vector<16x64xf32>
    %118 = arith.maximumf %116, %117 : vector<16x64xf32>
    %c0_76 = arith.constant 0 : index
    %c0_77 = arith.constant 0 : index
    %119 = vector.load %arg19[%c0_76, %c0_77] : memref<64x5xf32, #tpu.memory_space<vmem>>, vector<64x5xf32>
    %cst_78 = arith.constant dense<0.000000e+00> : vector<16x5xf32>
    %120 = tpu.matmul %118, %119, %cst_78 {dimension_numbers = #tpu.dot_dimension_numbers<[1], [0], [0], [1], [0, 0, 1, 1], [], []>} : vector<16x64xf32>, vector<64x5xf32>, vector<16x5xf32> -> vector<16x5xf32>
    %c0_79 = arith.constant 0 : index
    %c0_80 = arith.constant 0 : index
    %121 = vector.load %arg20[%c0_79, %c0_80] : memref<1x5xf32, #tpu.memory_space<vmem>>, vector<1x5xf32>
    %122 = vector.broadcast %121 : vector<1x5xf32> to vector<16x5xf32>
    %123 = arith.addf %120, %122 : vector<16x5xf32>
    %124 = arith.negf %123 : vector<16x5xf32>
    %125 = math.exp %124 : vector<16x5xf32>
    %cst_81 = arith.constant 1.000000e+00 : f32
    %126 = vector.broadcast %cst_81 : f32 to vector<16x5xf32>
    %127 = arith.addf %126, %125 : vector<16x5xf32>
    %128 = arith.divf %126, %127 : vector<16x5xf32>
    %c0_82 = arith.constant 0 : index
    %c0_83 = arith.constant 0 : index
    %129 = vector.load %arg21[%c0_82, %c0_83] : memref<6x4xf32, #tpu.memory_space<vmem>>, vector<6x4xf32>
    %cst_84 = arith.constant dense<0.000000e+00> : vector<2x4xf32>
    %130 = tpu.matmul %102, %129, %cst_84 {dimension_numbers = #tpu.dot_dimension_numbers<[1], [0], [0], [1], [0, 0, 1, 1], [], []>} : vector<2x6xf32>, vector<6x4xf32>, vector<2x4xf32> -> vector<2x4xf32>
    %c0_85 = arith.constant 0 : index
    %c0_86 = arith.constant 0 : index
    %131 = vector.load %arg22[%c0_85, %c0_86] : memref<1x4xf32, #tpu.memory_space<vmem>>, vector<1x4xf32>
    %132 = vector.broadcast %131 : vector<1x4xf32> to vector<2x4xf32>
    %133 = arith.addf %130, %132 : vector<2x4xf32>
    %cst_87 = arith.constant 0.000000e+00 : f32
    %134 = vector.broadcast %cst_87 : f32 to vector<2x4xf32>
    %135 = arith.maximumf %133, %134 : vector<2x4xf32>
    %c0_88 = arith.constant 0 : index
    %c0_89 = arith.constant 0 : index
    %136 = vector.load %arg23[%c0_88, %c0_89] : memref<4x8xf32, #tpu.memory_space<vmem>>, vector<4x8xf32>
    %cst_90 = arith.constant dense<0.000000e+00> : vector<2x8xf32>
    %137 = tpu.matmul %135, %136, %cst_90 {dimension_numbers = #tpu.dot_dimension_numbers<[1], [0], [0], [1], [0, 0, 1, 1], [], []>} : vector<2x4xf32>, vector<4x8xf32>, vector<2x8xf32> -> vector<2x8xf32>
    %c0_91 = arith.constant 0 : index
    %c0_92 = arith.constant 0 : index
    %138 = vector.load %arg24[%c0_91, %c0_92] : memref<1x8xf32, #tpu.memory_space<vmem>>, vector<1x8xf32>
    %139 = vector.broadcast %138 : vector<1x8xf32> to vector<2x8xf32>
    %140 = arith.addf %137, %139 : vector<2x8xf32>
    %cst_93 = arith.constant 0.000000e+00 : f32
    %141 = vector.broadcast %cst_93 : f32 to vector<2x8xf32>
    %142 = arith.maximumf %140, %141 : vector<2x8xf32>
    %c0_94 = arith.constant 0 : index
    %c0_95 = arith.constant 0 : index
    %143 = vector.load %arg25[%c0_94, %c0_95] : memref<8x4xf32, #tpu.memory_space<vmem>>, vector<8x4xf32>
    %cst_96 = arith.constant dense<0.000000e+00> : vector<2x4xf32>
    %144 = tpu.matmul %142, %143, %cst_96 {dimension_numbers = #tpu.dot_dimension_numbers<[1], [0], [0], [1], [0, 0, 1, 1], [], []>} : vector<2x8xf32>, vector<8x4xf32>, vector<2x4xf32> -> vector<2x4xf32>
    %c0_97 = arith.constant 0 : index
    %c0_98 = arith.constant 0 : index
    %145 = vector.load %arg26[%c0_97, %c0_98] : memref<1x4xf32, #tpu.memory_space<vmem>>, vector<1x4xf32>
    %146 = vector.broadcast %145 : vector<1x4xf32> to vector<2x4xf32>
    %147 = arith.addf %144, %146 : vector<2x4xf32>
    %148 = arith.negf %147 : vector<2x4xf32>
    %149 = math.exp %148 : vector<2x4xf32>
    %cst_99 = arith.constant 1.000000e+00 : f32
    %150 = vector.broadcast %cst_99 : f32 to vector<2x4xf32>
    %151 = arith.addf %150, %149 : vector<2x4xf32>
    %152 = arith.divf %150, %151 : vector<2x4xf32>
    %c0_100 = arith.constant 0 : index
    %c0_101 = arith.constant 0 : index
    %153 = vector.load %arg27[%c0_100, %c0_101] : memref<16x5xf32, #tpu.memory_space<vmem>>, vector<16x5xf32>
    tpu.vector_store %arg27[%c0_100, %c0_101], %128 {strides = array<i32>} : memref<16x5xf32, #tpu.memory_space<vmem>>, vector<16x5xf32>,
    %154 = tpu.concatenate %79, %100, %152 in 1 : vector<2x16xf32>, vector<2x4xf32>, vector<2x4xf32> -> vector<2x24xf32>
    %c0_102 = arith.constant 0 : index
    %c0_103 = arith.constant 0 : index
    %155 = vector.load %arg28[%c0_102, %c0_103] : memref<2x24xf32, #tpu.memory_space<vmem>>, vector<2x24xf32>
    tpu.vector_store %arg28[%c0_102, %c0_103], %154 {strides = array<i32>} : memref<2x24xf32, #tpu.memory_space<vmem>>, vector<2x24xf32>,
    return
  }
}

</mosaic_0001>

<bundles_post_ra>
// kernel: two_stage_autoencoder_forward.1
= control target key start
LH: loop header
LB: loop body
LE: loop exit
PB: predicated region body
PF: predicated region fallthrough
CT: control target
= control target key end

     0   :  { %vm115_vm0 = vcmask 1040384   ;;  %vm103_vm1 = vcmask 39936   ;;  %vm108_vm2 = vcmask 72704   ;;  %vm142_vm3 = vcmask 64512   ;;  %s1429_s4 = inlined_call_operand.vmem [shape: f32[2,4], index: 4, kind: input, shape index: {}]   ;;  %s1430_s5 = inlined_call_operand.vmem [shape: f32[9,32], index: 5, kind: input, shape index: {}]   ;;  %s1431_s1 = inlined_call_operand.vmem [shape: f32[16,5], index: 1, kind: input, shape index: {}]   ;;  %s1432_s6 = inlined_call_operand.vmem [shape: f32[32,16], index: 6, kind: input, shape index: {}]   ;;  %s1433_s0 = inlined_call_operand.vmem [shape: f32[2,8,8], index: 0, kind: input, shape index: {}]   ;;  %s1434_s7 = inlined_call_operand.vmem [shape: f32[8,16,128], index: 7, kind: input, shape index: {}]   ;;  %s1435_s9 = inlined_call_operand.vmem [shape: f32[128,16], index: 9, kind: input, shape index: {}]   ;;  %s1436_s11 = inlined_call_operand.vmem [shape: f32[4,8], index: 11, kind: input, shape index: {}]   ;;  %s1437_s2 = inlined_call_operand.vmem [shape: f32[2,4], index: 2, kind: input, shape index: {}]   ;;  %s1438_s8 = inlined_call_operand.vmem [shape: f32[1,128], index: 8, kind: input, shape index: {}]   ;;  %s1439_s12 = inlined_call_operand.vmem [shape: f32[1,8], index: 12, kind: input, shape index: {}]   ;;  %s1440_s10 = inlined_call_operand.vmem [shape: f32[1,16], index: 10, kind: input, shape index: {}]   ;;  %s1441_s13 = inlined_call_operand.vmem [shape: f32[8,4], index: 13, kind: input, shape index: {}]   ;;  %s1442_s14 = inlined_call_operand.vmem [shape: f32[1,4], index: 14, kind: input, shape index: {}]   ;;  %s1443_s16 = inlined_call_operand.vmem [shape: f32[1,4], index: 16, kind: input, shape index: {}]   ;;  %s1444_s15 = inlined_call_operand.vmem [shape: f32[4,4], index: 15, kind: input, shape index: {}]   ;;  %s1445_s3 = inlined_call_operand.vmem [shape: f32[16,1], index: 3, kind: input, shape index: {}]   ;;  %s1446_s22 = inlined_call_operand.vmem [shape: f32[1,4], index: 22, kind: input, shape index: {}]   ;;  %s1447_s21 = inlined_call_operand.vmem [shape: f32[6,4], index: 21, kind: input, shape index: {}]   ;;  %s1448_s17 = inlined_call_operand.vmem [shape: f32[18,64], index: 17, kind: input, shape index: {}]   ;;  %s1449_s18 = inlined_call_operand.vmem [shape: f32[1,64], index: 18, kind: input, shape index: {}]   ;;  %s1450_s24 = inlined_call_operand.vmem [shape: f32[1,8], index: 24, kind: input, shape index: {}]   ;;  %s1451_s19 = inlined_call_operand.vmem [shape: f32[64,5], index: 19, kind: input, shape index: {}]   ;;  %s1452_s23 = inlined_call_operand.vmem [shape: f32[4,8], index: 23, kind: input, shape index: {}]   ;;  %s1453_s25 = inlined_call_operand.vmem [shape: f32[8,4], index: 25, kind: input, shape index: {}]   ;;  %s1454_s20 = inlined_call_operand.vmem [shape: f32[1,5], index: 20, kind: input, shape index: {}]   ;;  %s1455_s26 = inlined_call_operand.vmem [shape: f32[1,4], index: 26, kind: input, shape index: {}]   ;;  %s1456_s27 = inlined_call_operand.vmem [shape: f32[16,5], index: 27, kind: output, shape index: {0}]   ;;  %s1457_s28 = inlined_call_operand.vmem [shape: f32[2,24], index: 28, kind: output, shape index: {1}]  }
   0x1   :  { %1464 = sst [smem:[#allocation2_spill]] %s1429_s4  ;;  %vm195_vm4 = vcmask 261120   ;;  %vm275_vm5 = vcmask 1041409   ;;  %vm277_vm6 = vcmask 130048   ;;  %vm554_vm7 = vcmask 1043456  }
   0x2   :  { %1465 = sst [smem:[#allocation3_spill]] %s1430_s5  ;;  %vm550_vm8 = vcmask 31744   ;;  %vm802_vm9 = vcmask 1045504   ;;  %vm685_vm10 = vcmask 1041408   ;;  %vm648_vm11 = vcmask 48128  }
   0x3   :  { %1466 = sst [smem:[#allocation4_spill]] %s1431_s1  ;;  %vm668_vm12 = vcmask 113664   ;;  %vm678_vm13 = vcmask 146432   ;;  %vm726_vm14 = vcmask 523264  }
   0x4   :  { %1467 = sst [smem:[#allocation5_spill]] %s1432_s6 }
   0x5   :  { %1468 = sst [smem:[#allocation6_spill]] %s1433_s0 }
   0x6   :  { %1469 = sst [smem:[#allocation7_spill]] %s1434_s7 }
   0x7   :  { %1470 = sst [smem:[#allocation8_spill]] %s1435_s9 }
   0x8   :  { %1471 = sst [smem:[#allocation9_spill]] %s1436_s11 }
   0x9   :  { %1472 = sst [smem:[#allocation10_spill]] %s1437_s2 }
   0xa   :  { %1473 = sst [smem:[#allocation11_spill]] %s1438_s8 }
   0xb   :  { %1474 = sst [smem:[#allocation12_spill]] %s1439_s12  ;;  %s1007_s12 = smov 5  }
   0xc   :  { %1475 = sst [smem:[#allocation13_spill]] %s1440_s10 }
   0xd   :  { %1476 = sst [smem:[#allocation14_spill]] %s1441_s13 }
   0xe   :  { %s1477_s8 = sld [smem:[#allocation2_spill]] }
   0xf   :  { %s1478_s9 = sld [smem:[#allocation3_spill]] }
  0x10   :  { %s1479_s11 = sld [smem:[#allocation4_spill]] }
  0x11   :  { %s1480_s7 = sld [smem:[#allocation5_spill]] }
  0x12   :  { %s1482_s5 = sld [smem:[#allocation7_spill]] }
  0x13   :  { %s1484_s0 = sld [smem:[#allocation9_spill]] }
  0x14   :  { %v1161_v0 = vld [vmem:[%s1477_s8] sm:$0x3]  ;;  %s1485_s4 = sld [smem:[#allocation10_spill]] }
  0x15   :  { %v107_v1 = vld [vmem:[%s1478_s9 + $0x8] sm:$0x1]  ;;  %v95_v2 = vperm.slane %v1161_v0, 0  ;;  %v94_v3 = vrot.slane %v1161_v0, 1  ;;  %v106_v5 = vld [vmem:[%s1478_s9] sm:$0xff]  ;;  %s1483_s9 = sld [smem:[#allocation8_spill]] }
  0x16   :  { %928 = vmatpush.msk.msra.mxu0 %vm115_vm0, %v107_v1  ;;  %v90_v6 = vld [vmem:[%s1479_s11] sm:$0xff]  ;;  %v91_v9 = vld [vmem:[%s1479_s11 + $0x8] sm:$0xff]  ;;  %s1487_s30 = sld [smem:[#allocation11_spill]] }
  0x17   :  { %97 = vrot.lane.b32.xlu0 %v95_v2, %s1007_s12  ;;  %v96_v4 = vperm.slane %v94_v3, 0  ;;  %v194_v12 = vld [vmem:[%s1480_s7 + $0x18] sm:$0xff]  ;;  %v193_v13 = vld [vmem:[%s1480_s7 + $0x10] sm:$0xff]  ;;  %v192_v18 = vld [vmem:[%s1480_s7 + $0x8] sm:$0xff]  ;;  %s1489_s6 = sld [smem:[#allocation13_spill]] }
  0x18   :  { %134 = vmatpush.msra.mxu0 %v106_v5  ;;  %214 = vmatpush.msra.mxu3 %v194_v12  ;;  %v191_v19 = vld [vmem:[%s1480_s7] sm:$0xff]  ;;  %v938_v26 = vld [vmem:[%s1482_s5 + $0x18] sm:$0xff]  ;;  %v268_v27 = vld [vmem:[%s1482_s5 + $0x8] sm:$0xff]  ;;  %s1486_s7 = sld [smem:[#allocation14_spill]] }
  0x19   :  { %v942_v28 = vld [vmem:[%s1482_s5 + $0x28] sm:$0xff]  ;;  %v945_v29 = vld [vmem:[%s1482_s5 + $0x38] sm:$0xff]  ;;  %v937_v30 = vld [vmem:[%s1482_s5 + $0x10] sm:$0xff] }
  0x1a   :  { %215 = vmatpush.msra.mxu3 %v193_v13  ;;  %346 = vmatpush.msrb.mxu0 %v942_v28  ;;  %v267_v31 = vld [vmem:[%s1482_s5] sm:$0xff]  ;;  %v944_v33 = vld [vmem:[%s1482_s5 + $0x30] sm:$0xff]  ;;  %v948_v34 = vld [vmem:[%s1482_s5 + $0x48] sm:$0xff] }
  0x1b   :  { %v941_v32 = vld [vmem:[%s1482_s5 + $0x20] sm:$0xff]  ;;  %v951_v35 = vld [vmem:[%s1482_s5 + $0x58] sm:$0xff]  ;;  %v954_v36 = vld [vmem:[%s1482_s5 + $0x68] sm:$0xff] }
  0x1c   :  { %216 = vmatpush.msra.mxu3 %v192_v18  ;;  %347 = vmatpush.msrb.mxu0 %v941_v32  ;;  %v957_v37 = vld [vmem:[%s1482_s5 + $0x78] sm:$0xff]  ;;  %v947_v38 = vld [vmem:[%s1482_s5 + $0x40] sm:$0xff]  ;;  %v950_v39 = vld [vmem:[%s1482_s5 + $0x50] sm:$0xff] }
  0x1d   :  { %v953_v40 = vld [vmem:[%s1482_s5 + $0x60] sm:$0xff]  ;;  %v956_v41 = vld [vmem:[%s1482_s5 + $0x70] sm:$0xff]  ;;  %v519_v49 = vld [vmem:[%s1483_s9 + $0x78] sm:$0xff]  ;;  %s1011_s5 = smov 6  }
  0x1e   :  { %217 = vmatpush.msra.mxu3 %v191_v19  ;;  %v545_v54 = vld [vmem:[%s1484_s0] sm:$0xf]  ;;  %v518_v58 = vld [vmem:[%s1483_s9 + $0x70] sm:$0xff]  ;;  %v517_v61 = vld [vmem:[%s1483_s9 + $0x68] sm:$0xff] }
  0x1f   :  { %99 = vrot.lane.b32.xlu0 %v96_v4, %s1007_s12  ;;  %s1481_s12 = sld [smem:[#allocation6_spill]]  ;;  %v514_v12 = vld [vmem:[%s1483_s9 + $0x50] sm:$0xff]  ;;  %v513_v13 = vld [vmem:[%s1483_s9 + $0x48] sm:$0xff]  ;;  %v508_v18 = vld [vmem:[%s1483_s9 + $0x20] sm:$0xff] }
  0x20   :  { %375 = vmatpush.msrb.mxu3 %v945_v29  ;;  %v507_v19 = vld [vmem:[%s1483_s9 + $0x18] sm:$0xff] }
  0x22   :  { %376 = vmatpush.msrb.mxu3 %v944_v33 }
  0x25   :  { %v88_v14 = vld [vmem:[%s1481_s12] sm:$0xff]  ;;  %v89_v16 = vld [vmem:[%s1481_s12 + $0x8] sm:$0xff]  ;;  %s1488_s12 = sld [smem:[#allocation12_spill]] }
  0x89   :  { %v98_v7 = vpop.permute.xlu0 %97 }
  0x8a   :  { %v104_v8 = vsel %vm103_vm1, %v90_v6, %v98_v7 }
  0x8b   :  { %929 = vmatmul.msk.f32.vlgmr.msra.gmra.mxu0 %vm108_vm2, %v104_v8 }
  0x8c   :  { %462 = vmatpush.msra.mxu0 %v954_v36 }
  0x8e   :  { %463 = vmatpush.msra.mxu0 %v953_v40  ;;  %v986_v40 = vld [vmem:[%s1488_s12] ss:$0 sm:$0xff] }
  0x91   :  { %v100_v10 = vpop.permute.xlu0 %99 }
  0x92   :  { %v105_v11 = vsel %vm103_vm1, %v91_v9, %v100_v10  ;;  %v544_v9 = vld [vmem:[%s1485_s4] sm:$0x3] }
  0x93   :  { %930 = vmatmul.msk.f32.gmra.mxu0 %vm108_vm2, %v105_v11  ;;  %v516_v10 = vld [vmem:[%s1483_s9 + $0x60] sm:$0xff]  ;;  %v515_v11 = vld [vmem:[%s1483_s9 + $0x58] sm:$0xff] }
 0x108   :  { %v136_v15 = vpop.f32.mrf.mxu0 }
 0x109   :  { %161 = vmatpush.msra.mxu1 %v136_v15  ;;  %v511_v15 = vld [vmem:[%s1483_s9 + $0x38] sm:$0xff] }
 0x10a   :  { %931 = vmatmul.msk.f32.vlgmr.msra.gmra.mxu1 %vm142_vm3, %v88_v14 }
 0x110   :  { %v139_v17 = vpop.f32.mrf.mxu0 }
 0x111   :  { %184 = vmatpush.msra.mxu2 %v139_v17  ;;  %v509_v17 = vld [vmem:[%s1483_s9 + $0x28] sm:$0xff] }
 0x112   :  { %932 = vmatmul.msk.f32.vlgmr.msra.gmra.mxu2 %vm142_vm3, %v89_v16 }
 0x187   :  { %v163_v20 = vpop.f32.mrf.mxu1 }
 0x188   :  { %v189_v21 = vmax.f32 %v163_v20, 0.0  ;;  %v506_v20 = vld [vmem:[%s1483_s9 + $0x10] sm:$0xff] }
 0x18a   :  { %933 = vmatmul.msk.f32.vlgmr.msra.gmra.mxu3 %vm195_vm4, %v189_v21  ;;  %v505_v21 = vld [vmem:[%s1483_s9 + $0x8] sm:$0xff] }
 0x18b   :  { %491 = vmatpush.msra.mxu3 %v957_v37  ;;  %v985_v37 = vld [vmem:[%s1487_s30] ss:$0 sm:$0xff] }
 0x18d   :  { %492 = vmatpush.msra.mxu3 %v956_v41 }
 0x195   :  { %v186_v22 = vpop.f32.mrf.mxu2 }
 0x196   :  { %v190_v23 = vmax.f32 %v186_v22, 0.0  ;;  %v504_v22 = vld [vmem:[%s1483_s9] sm:$0xff] }
 0x198   :  { %934 = vmatmul.msk.f32.gmra.mxu3 %vm195_vm4, %v190_v23  ;;  %v579_v23 = vld [vmem:[%s1486_s7] sm:$0xff]  ;;  %s1009_s7 = smov 16  }
 0x20d   :  { %v219_v24 = vpop.f32.mrf.mxu3 }
 0x20e   :  { %240 = vmatpush.msrb.mxu1 %v219_v24 }
 0x20f   :  { %935 = vmatmul.msk.f32.vlgmr.msrb.gmra.mxu1 %vm142_vm3, %v88_v14  ;;  %v512_v14 = vld [vmem:[%s1483_s9 + $0x40] sm:$0xff] }
 0x210   :  { %294 = vmatpush.msra.mxu1 %v938_v26 }
 0x212   :  { %295 = vmatpush.msra.mxu1 %v937_v30 }
 0x214   :  { %404 = vmatpush.msrb.mxu1 %v948_v34 }
 0x216   :  { %405 = vmatpush.msrb.mxu1 %v947_v38 }
 0x21b   :  { %v222_v25 = vpop.f32.mrf.mxu3 }
 0x21c   :  { %260 = vmatpush.msrb.mxu2 %v222_v25 }
 0x21d   :  { %936 = vmatmul.msk.f32.vlgmr.msrb.gmra.mxu2 %vm142_vm3, %v89_v16  ;;  %v510_v16 = vld [vmem:[%s1483_s9 + $0x30] sm:$0xff]  ;;  %s1010_s9 = smov 4  }
 0x21e   :  { %318 = vmatpush.msra.mxu2 %v268_v27 }
 0x220   :  { %319 = vmatpush.msra.mxu2 %v267_v31 }
 0x222   :  { %433 = vmatpush.msrb.mxu2 %v951_v35 }
 0x224   :  { %434 = vmatpush.msrb.mxu2 %v950_v39 }
 0x28c   :  { %v242_v42 = vpop.f32.mrf.mxu1 }
 0x28d   :  { %v265_v43 = vmax.f32 %v242_v42, 0.0 }
 0x28f   :  { %v274_v44 = vrot.slane %v265_v43, 1  ;;  %v327_v47 = vrot.slane %v265_v43, 2  ;;  %v356_v48 = vrot.slane %v265_v43, 3  ;;  %v385_v59 = vrot.slane %v265_v43, 4 }
 0x290   :  { %v414_v62 = vrot.slane %v265_v43, 5  ;;  %v443_v1 = vrot.slane %v265_v43, 6  ;;  %v472_v3 = vrot.slane %v265_v43, 7 }
 0x2a0   :  { %v262_v45 = vpop.f32.mrf.mxu2 }
 0x2a1   :  { %v266_v46 = vmax.f32 %v262_v45, 0.0 }
 0x2a3   :  { %v276_v50 = vsel %vm275_vm5, %v266_v46, %v274_v44  ;;  %v300_v51 = vrot.slane %v266_v46, 7  ;;  %v328_v52 = vrot.slane %v266_v46, 1  ;;  %v357_v53 = vrot.slane %v266_v46, 2 }
 0x2a4   :  { %939 = vmatmul.msk.f32.vlgmr.msra.gmra.mxu1 %vm277_vm6, %v276_v50  ;;  %v386_v60 = vrot.slane %v266_v46, 3  ;;  %v415_v63 = vrot.slane %v266_v46, 4  ;;  %v444_v2 = vrot.slane %v266_v46, 5  ;;  %v473_v4 = vrot.slane %v266_v46, 6  ;;  %v608_v46 = vld [vmem:[%s1444_s15] sm:$0xf] }
 0x2a5   :  { %v301_v55 = vsel %vm275_vm5, %v300_v51, %v265_v43  ;;  %v329_v56 = vsel %vm275_vm5, %v328_v52, %v327_v47  ;;  %v358_v57 = vsel %vm275_vm5, %v357_v53, %v356_v48  ;;  %524 = vmatpush.msra.mxu1 %v519_v49  ;;  %v988_v47 = vld [vmem:[%s1442_s14] ss:$0 sm:$0xff]  ;;  %v1008_v52 = vmov 0   ;;  %v657_v53 = vld [vmem:[%s1445_s3 + $0x8] sm:$0xff] }
 0x2a6   :  { %940 = vmatmul.msk.f32.vlgmr.msra.gmra.mxu2 %vm277_vm6, %v301_v55  ;;  %943 = vmatmul.msk.f32.vlgmr.msrb.gmra.mxu0 %vm277_vm6, %v329_v56  ;;  %v387_v5 = vsel %vm275_vm5, %v386_v60, %v385_v59  ;;  %v416_v6 = vsel %vm275_vm5, %v415_v63, %v414_v62  ;;  %v445_v7 = vsel %vm275_vm5, %v444_v2, %v443_v1  ;;  %v656_v51 = vld [vmem:[%s1445_s3] sm:$0xff]  ;;  %v672_v62 = vld [vmem:[%s1448_s17 + $0x8] sm:$0xff] }
 0x2a7   :  { %946 = vmatmul.msk.f32.vlgmr.msrb.gmra.mxu3 %vm277_vm6, %v358_v57  ;;  %959 = vmatpush.msk.msra.mxu2 %vm554_vm7, %v545_v54  ;;  %v474_v8 = vsel %vm275_vm5, %v473_v4, %v472_v3  ;;  %v989_v54 = vld [vmem:[%s1443_s16] ss:$0 sm:$0xff] }
 0x2a8   :  { %525 = vmatpush.msra.mxu1 %v518_v58  ;;  %602 = vmatpush.msrb.mxu0 %v579_v23  ;;  %v987_v57 = vld [vmem:[%s1489_s6] ss:$0 sm:$0xff] }
 0x2a9   :  { %962 = vmatpush.msk.msrb.mxu3 %vm554_vm7, %v608_v46  ;;  %983 = vset.pattern.permute.xlu2 %v1008_v52  ;;  %v794_v60 = vld [vmem:[%s1447_s21] sm:$0x3f] }
 0x2aa   :  { %526 = vmatpush.msra.mxu1 %v517_v61  ;;  %984 = vset.pattern.permute.xlu0 %v1008_v52  ;;  %v673_v61 = vld [vmem:[%s1448_s17 + $0x10] sm:$0x3]  ;;  %v671_v63 = vld [vmem:[%s1448_s17] sm:$0xff] }
 0x2ab   :  { %660 = vperm.xlu2 %983, %v656_v51  }
 0x2ac   :  { %949 = vmatmul.msk.f32.vlgmr.msrb.gmra.mxu1 %vm277_vm6, %v387_v5 }
 0x2ad   :  { %527 = vmatpush.msra.mxu1 %v516_v10 }
 0x2ae   :  { %952 = vmatmul.msk.f32.vlgmr.msrb.gmra.mxu2 %vm277_vm6, %v416_v6  ;;  %955 = vmatmul.msk.f32.vlgmr.msra.gmra.mxu0 %vm277_vm6, %v445_v7 }
 0x2af   :  { %958 = vmatmul.msk.f32.vlgmr.msra.gmra.mxu3 %vm277_vm6, %v474_v8  ;;  %528 = vmatpush.msra.mxu1 %v515_v11 }
 0x2b0   :  { %971 = vmatpush.msk.msra.mxu3 %vm802_vm9, %v794_v60  ;;  %964 = vmatpush.msk.msrb.mxu2 %vm685_vm10, %v673_v61 }
 0x2b1   :  { %529 = vmatpush.msra.mxu1 %v514_v12  ;;  %v721_v12 = vld [vmem:[%s1451_s19 + $0x38] sm:$0xff] }
 0x2b2   :  { %703 = vmatpush.msrb.mxu2 %v672_v62  ;;  %741 = vmatpush.msra.mxu0 %v721_v12 }
 0x2b3   :  { %530 = vmatpush.msra.mxu1 %v513_v13  ;;  %665 = vperm.xlu2 %983, %v657_v53   ;;  %v827_v13 = vld [vmem:[%s1452_s23] sm:$0xf] }
 0x2b4   :  { %704 = vmatpush.msrb.mxu2 %v671_v63 }
 0x2b5   :  { %531 = vmatpush.msra.mxu1 %v512_v14  ;;  %v719_v14 = vld [vmem:[%s1451_s19 + $0x28] sm:$0xff] }
 0x2b6   :  { %960 = vmatmul.msk.f32.vlgmr.msra.gmra.mxu2 %vm550_vm8, %v544_v9 }
 0x2b7   :  { %532 = vmatpush.msra.mxu1 %v511_v15  ;;  %v718_v15 = vld [vmem:[%s1451_s19 + $0x20] sm:$0xff] }
 0x2b9   :  { %533 = vmatpush.msra.mxu1 %v510_v16  ;;  %v717_v16 = vld [vmem:[%s1451_s19 + $0x18] sm:$0xff] }
 0x2bb   :  { %534 = vmatpush.msra.mxu1 %v509_v17  ;;  %v716_v17 = vld [vmem:[%s1451_s19 + $0x10] sm:$0xff] }
 0x2bd   :  { %535 = vmatpush.msra.mxu1 %v508_v18  ;;  %v715_v18 = vld [vmem:[%s1451_s19 + $0x8] sm:$0xff] }
 0x2bf   :  { %536 = vmatpush.msra.mxu1 %v507_v19  ;;  %v714_v19 = vld [vmem:[%s1451_s19] sm:$0xff] }
 0x2c1   :  { %537 = vmatpush.msra.mxu1 %v506_v20  ;;  %v859_v20 = vld [vmem:[%s1453_s25] sm:$0xff] }
 0x2c2   :  { %882 = vmatpush.msra.mxu2 %v859_v20 }
 0x2c3   :  { %538 = vmatpush.msra.mxu1 %v505_v21  ;;  %v990_v21 = vld [vmem:[%s1446_s22] ss:$0 sm:$0xff] }
 0x2c5   :  { %539 = vmatpush.msra.mxu1 %v504_v22 }
 0x305   :  { %v661_v3 = vpop.permute.xlu2 %660 }
 0x30d   :  { %v666_v10 = vpop.permute.xlu2 %665 }
 0x321   :  { %v297_v24 = vpop.f32.mrf.mxu1 }
 0x323   :  { %v349_v25 = vpop.f32.mrf.mxu0 }
 0x329   :  { %v321_v26 = vpop.f32.mrf.mxu2  ;;  %v407_v31 = vpop.f32.mrf.mxu1 }
 0x32a   :  { %v322_v27 = vadd.f32 %v321_v26, %v297_v24  ;;  %v378_v28 = vpop.f32.mrf.mxu3 }
 0x32b   :  { %v465_v35 = vpop.f32.mrf.mxu0 }
 0x32c   :  { %v352_v29 = vadd.f32 %v349_v25, %v322_v27  ;;  %v991_v25 = vld [vmem:[%s1449_s18] ss:$0 sm:$0xff] }
 0x32e   :  { %v381_v30 = vadd.f32 %v378_v28, %v352_v29 }
 0x330   :  { %v410_v32 = vadd.f32 %v407_v31, %v381_v30 }
 0x331   :  { %v436_v33 = vpop.f32.mrf.mxu2 }
 0x332   :  { %v439_v34 = vadd.f32 %v436_v33, %v410_v32  ;;  %v494_v38 = vpop.f32.mrf.mxu3  ;;  %v992_v32 = vld [vmem:[%s1450_s24] ss:$0 sm:$0xff] }
 0x334   :  { %v468_v36 = vadd.f32 %v465_v35, %v439_v34  ;;  %v993_v35 = vld [vmem:[%s1454_s20] ss:$0 sm:$0xff] }
 0x336   :  { %v497_v39 = vadd.f32 %v494_v38, %v468_v36 }
 0x338   :  { %v502_v41 = vadd.f32 %v985_v37, %v497_v39 }
 0x339   :  { %v575_v42 = vpop.f32.mrf.mxu2 }
 0x33a   :  { %v503_v43 = vmax.f32 %v502_v41, 0.0  ;;  %v576_v44 = vadd.f32 %v986_v40, %v575_v42 }
 0x33c   :  { %v578_v45 = vmax.f32 %v576_v44, 0.0  ;;  %540 = vmatmul.f32.vlgmr.msra.gmra.mxu1 %v503_v43 }
 0x33e   :  { %961 = vmatmul.msk.f32.vlgmr.msrb.gmra.mxu0 %vm142_vm3, %v578_v45 }
 0x3b9   :  { %v541_v58 = vpop.f32.mrf.mxu1 }
 0x3ba   :  { %v1351_v59 = vadd.f32 %v987_v57, %v541_v58 }
 0x3bb   :  { %v604_v48 = vpop.f32.mrf.mxu0 }
 0x3bc   :  { %v605_v49 = vadd.f32 %v988_v47, %v604_v48 }
 0x3be   :  { %v607_v50 = vmax.f32 %v605_v49, 0.0 }
 0x3c0   :  { %963 = vmatmul.msk.f32.vlgmr.msrb.gmra.mxu3 %vm550_vm8, %v607_v50 }
 0x3c1   :  { %973 = vmatpush.msk.msrb.mxu3 %vm554_vm7, %v827_v13 }
 0x443   :  { %v636_v55 = vpop.f32.mrf.mxu3 }
 0x444   :  { %v637_v56 = vadd.f32 %v989_v54, %v636_v55 }
 0x446   :  { %908 = vrot.lane.b32.xlu0 %v637_v56, %s1009_s7  ;;  %640 = vrot.lane.b32.xlu1 %v637_v56, %s1010_s9 }
 0x44e   :  { %645 = vrot.lane.b32.xlu1 %v1351_v59, %s1011_s5 }
 0x4b8   :  { %v641_v1 = vpop.permute.xlu1 %640  ;;  %v909_v20 = vpop.permute.xlu0 %908 }
 0x4b9   :  { %v643_v2 = vsel %vm550_vm8, %v1161_v0, %v641_v1  ;;  %v720_v0 = vld [vmem:[%s1451_s19 + $0x30] sm:$0xff] }
 0x4ba   :  { %972 = vmatmul.msk.f32.vlgmr.msra.gmra.mxu3 %vm648_vm11, %v643_v2  ;;  %742 = vmatpush.msra.mxu0 %v720_v0 }
 0x4bc   :  { %743 = vmatpush.msra.mxu0 %v719_v14 }
 0x4be   :  { %744 = vmatpush.msra.mxu0 %v718_v15 }
 0x4c0   :  { %v646_v4 = vpop.permute.xlu1 %645  ;;  %745 = vmatpush.msra.mxu0 %v717_v16 }
 0x4c1   :  { %v649_v5 = vsel %vm648_vm11, %v643_v2, %v646_v4 }
 0x4c2   :  { %v652_v6 = vperm.slane %v649_v5, 0  ;;  %v651_v7 = vrot.slane %v649_v5, 1  ;;  %746 = vmatpush.msra.mxu0 %v716_v17  ;;  %v994_v5 = vld [vmem:[%s1455_s26] ss:$0 sm:$0xff]  ;;  %s1012_s26 = smov 20  }
 0x4c4   :  { %v669_v8 = vsel %vm668_vm12, %v652_v6, %v661_v3  ;;  %v653_v9 = vperm.slane %v651_v7, 0  ;;  %747 = vmatpush.msra.mxu0 %v715_v18 }
 0x4c5   :  { %965 = vmatmul.msk.f32.vlgmr.msrb.gmra.mxu2 %vm678_vm13, %v669_v8 }
 0x4c6   :  { %v670_v11 = vsel %vm668_vm12, %v653_v9, %v666_v10  ;;  %748 = vmatpush.msra.mxu0 %v714_v19  ;;  %vm916_vm12 = vcmask 162816  }
 0x4cd   :  { %966 = vmatmul.msk.f32.gmra.mxu2 %vm678_vm13, %v670_v11  ;;  %vm918_vm13 = vcmask 189440  }
 0x53d   :  { %v823_v22 = vpop.f32.mrf.mxu3 }
 0x53e   :  { %v824_v23 = vadd.f32 %v990_v21, %v823_v22  ;;  %v915_v21 = vsel %vm277_vm6, %v1351_v59, %v909_v20 }
 0x540   :  { %v826_v24 = vmax.f32 %v824_v23, 0.0 }
 0x542   :  { %974 = vmatmul.msk.f32.vlgmr.msrb.gmra.mxu3 %vm550_vm8, %v826_v24 }
 0x548   :  { %v706_v26 = vpop.f32.mrf.mxu2 }
 0x549   :  { %v707_v27 = vadd.f32 %v991_v25, %v706_v26 }
 0x54b   :  { %v712_v28 = vmax.f32 %v707_v27, 0.0 }
 0x54d   :  { %967 = vmatmul.msk.f32.vlgmr.msra.gmra.mxu0 %vm726_vm14, %v712_v28 }
 0x550   :  { %v709_v29 = vpop.f32.mrf.mxu2 }
 0x551   :  { %v710_v30 = vadd.f32 %v991_v25, %v709_v29 }
 0x553   :  { %v713_v31 = vmax.f32 %v710_v30, 0.0 }
 0x555   :  { %968 = vmatmul.msk.f32.gmra.mxu0 %vm726_vm14, %v713_v31 }
 0x5c5   :  { %v855_v33 = vpop.f32.mrf.mxu3 }
 0x5c6   :  { %v856_v34 = vadd.f32 %v992_v32, %v855_v33 }
 0x5c8   :  { %v858_v36 = vmax.f32 %v856_v34, 0.0 }
 0x5ca   :  { %v750_v37 = vpop.f32.mrf.mxu0  ;;  %975 = vmatmul.msk.f32.vlgmr.msra.gmra.mxu2 %vm142_vm3, %v858_v36 }
 0x5cb   :  { %v751_v38 = vadd.f32 %v993_v35, %v750_v37 }
 0x5cd   :  { %v969_v39 = vmul.f32 -1.442695, %v751_v38 }
 0x5cf   :  { %995 = vpow2.f32 %v969_v39 }
 0x5d2   :  { %v753_v40 = vpop.f32.mrf.mxu0 }
 0x5d3   :  { %v754_v41 = vadd.f32 %v993_v35, %v753_v40 }
 0x5d5   :  { %v996_v42 = vpop.eup %995  ;;  %v970_v43 = vmul.f32 -1.442695, %v754_v41 }
 0x5d6   :  { %v762_v44 = vadd.f32 1.0, %v996_v42 }
 0x5d7   :  { %997 = vpow2.f32 %v970_v43 }
 0x5d8   :  { %999 = vrcp.f32 %v762_v44  ;;  %v775_v50 = vand.u32 2147483648, %v762_v44  ;;  %v773_v52 = vand.u32 2147483647, %v762_v44  ;;  %vm769_vm0 = vweird.f32 %v762_v44 }
 0x5da   :  { %v776_v55 = vor.u32 1.1754944e-38, %v775_v50  ;;  %vm774_vm3 = vcmp.eq.f32.partialorder %v773_v52, 8.507059e+37 }
 0x5dd   :  { %v998_v45 = vpop.eup %997 }
 0x5de   :  { %v1000_v46 = vpop.eup %999  ;;  %v763_v47 = vadd.f32 1.0, %v998_v45 }
 0x5df   :  { %v765_v48 = vmul.f32 %v1000_v46, %v762_v44  ;;  %vm770_vm15 = vweird.f32 %v1000_v46 }
 0x5e0   :  { %1001 = vrcp.f32 %v763_v47  ;;  %vm771_vm2 = vmor %vm769_vm0, %vm770_vm15  ;;  %v790_v61 = vand.u32 2147483648, %v763_v47  ;;  %v788_v63 = vand.u32 2147483647, %v763_v47  ;;  %vm784_vm5 = vweird.f32 %v763_v47 }
 0x5e1   :  { %v766_v49 = vsub.f32 1.0, %v765_v48 }
 0x5e2   :  { %v791_v2 = vor.u32 1.1754944e-38, %v790_v61  ;;  %vm789_vm8 = vcmp.eq.f32.partialorder %v788_v63, 8.507059e+37 }
 0x5e3   :  { %v767_v51 = vmul.f32 %v1000_v46, %v766_v49 }
 0x5e5   :  { %v768_v53 = vadd.f32 %v1000_v46, %v767_v51 }
 0x5e6   :  { %v1002_v54 = vpop.eup %1001 }
 0x5e7   :  { %v772_v56 = vsel %vm771_vm2, %v1000_v46, %v768_v53  ;;  %v780_v57 = vmul.f32 %v1002_v54, %v763_v47  ;;  %vm785_vm4 = vweird.f32 %v1002_v54 }
 0x5e8   :  { %v777_v58 = vsel %vm774_vm3, %v776_v55, %v772_v56  ;;  %vm786_vm7 = vmor %vm784_vm5, %vm785_vm4 }
 0x5e9   :  { %906 = vst.msk [vmem:[%s1456_s27] sm:$0xff] %vm103_vm1, %v777_v58  ;;  %v781_v60 = vsub.f32 1.0, %v780_v57 }
 0x5eb   :  { %v782_v62 = vmul.f32 %v1002_v54, %v781_v60 }
 0x5ed   :  { %v783_v1 = vadd.f32 %v1002_v54, %v782_v62 }
 0x5ef   :  { %v787_v3 = vsel %vm786_vm7, %v1002_v54, %v783_v1 }
 0x5f0   :  { %v792_v4 = vsel %vm789_vm8, %v791_v2, %v787_v3 }
 0x5f1   :  { %907 = vst.msk [vmem:[%s1456_s27 + $0x8] sm:$0xff] %vm103_vm1, %v792_v4 }
 0x64d   :  { %v884_v6 = vpop.f32.mrf.mxu2 }
 0x64e   :  { %v885_v7 = vadd.f32 %v994_v5, %v884_v6 }
 0x650   :  { %v976_v8 = vmul.f32 -1.442695, %v885_v7 }
 0x652   :  { %1003 = vpow2.f32 %v976_v8 }
 0x658   :  { %v1004_v9 = vpop.eup %1003 }
 0x659   :  { %v890_v10 = vadd.f32 1.0, %v1004_v9 }
 0x65b   :  { %1005 = vrcp.f32 %v890_v10  ;;  %v902_v13 = vand.u32 2147483648, %v890_v10  ;;  %v900_v15 = vand.u32 2147483647, %v890_v10  ;;  %vm896_vm1 = vweird.f32 %v890_v10 }
 0x65d   :  { %v903_v17 = vor.u32 1.1754944e-38, %v902_v13  ;;  %vm901_vm11 = vcmp.eq.f32.partialorder %v900_v15, 8.507059e+37 }
 0x661   :  { %v1006_v11 = vpop.eup %1005 }
 0x662   :  { %v892_v12 = vmul.f32 %v1006_v11, %v890_v10  ;;  %vm897_vm9 = vweird.f32 %v1006_v11 }
 0x663   :  { %vm898_vm10 = vmor %vm896_vm1, %vm897_vm9 }
 0x664   :  { %v893_v0 = vsub.f32 1.0, %v892_v12 }
 0x666   :  { %v894_v14 = vmul.f32 %v1006_v11, %v893_v0 }
 0x668   :  { %v895_v16 = vadd.f32 %v1006_v11, %v894_v14 }
 0x66a   :  { %v899_v18 = vsel %vm898_vm10, %v1006_v11, %v895_v16 }
 0x66b   :  { %v904_v19 = vsel %vm901_vm11, %v903_v17, %v899_v18 }
 0x66c   :  { %912 = vrot.lane.b32.xlu1 %v904_v19, %s1012_s26 }
 0x6de   :  { %v913_v22 = vpop.permute.xlu1 %912 }
 0x6df   :  { %v917_v23 = vsel %vm916_vm12, %v915_v21, %v913_v22 }
 0x6e0   :  { %919 = vst.msk [vmem:[%s1457_s28] sm:$0x3] %vm918_vm13, %v917_v23 }

</bundles_post_ra>
